<compile_context>
chip_gen: v7x
topology: tpu7x:2x2x1
jax: 0.10.0
libtpu: 0.0.40
codegen_flags: <defaults>
</compile_context>

<pallas_src>
import functools
import math

import jax
import jax.numpy as jnp
from jax.experimental import pallas as pl
from jax.experimental.pallas import tpu as pltpu

_LOG_2PI = math.log(2.0 * math.pi)
_W3_PAD = 128  # fc3 weight padded to 128 output lanes (free on the MXU)


def _round_up(x, m):
    return ((x + m - 1) // m) * m


def _use_bf16_activations():
    """bf16 VPU/EUP exists on v6e and later; keep f32 tanh on v5 and older."""
    try:
        kind = jax.devices()[0].device_kind.lower()
    except Exception:
        return False
    return not any(old in kind for old in ("v2", "v3", "v4", "v5"))


# ----------------------------------------------------------------------------
# Shared MLP body (bf16 MXU matmuls, f32 accumulation)
# ----------------------------------------------------------------------------
def _mlp_mu(state_ref, w1_ref, b1_ref, w2_ref, b2_ref, w3_ref, b3_ref,
            a_dim, bf16_act):
    x = state_ref[...].astype(jnp.bfloat16)                            # (blk, S)

    h1 = jnp.dot(x, w1_ref[...], preferred_element_type=jnp.float32)
    h1 = h1 + b1_ref[...]                                              # f32
    if bf16_act:
        h1 = jnp.tanh(h1.astype(jnp.bfloat16))                         # bf16 EUP
    else:
        h1 = jnp.tanh(h1).astype(jnp.bfloat16)                         # f32 EUP

    h2 = jnp.dot(h1, w2_ref[...], preferred_element_type=jnp.float32)
    h2 = h2 + b2_ref[...]
    if bf16_act:
        h2 = jnp.tanh(h2.astype(jnp.bfloat16))
    else:
        h2 = jnp.tanh(h2).astype(jnp.bfloat16)

    # fc3 weight is zero-padded to 128 output lanes (zero MXU cost); slice to
    # the A real lanes BEFORE the bias add + sigmoid so the EUP only does A
    # lanes of work per row.
    mu_acc = jnp.dot(h2, w3_ref[...], preferred_element_type=jnp.float32)
    mu = jax.nn.sigmoid(mu_acc[:, :a_dim] + b3_ref[...])               # (blk, A) f32
    return mu


# ----------------------------------------------------------------------------
# Kernels
# ----------------------------------------------------------------------------
def _policy_kernel(state_ref, action_ref,
                   w1_ref, b1_ref, w2_ref, b2_ref, w3_ref, b3_ref,
                   inv_std_ref, const_ref,
                   mu_ref, logp_ref, *, bf16_act):
    a_dim = mu_ref.shape[1]
    mu = _mlp_mu(state_ref, w1_ref, b1_ref, w2_ref, b2_ref, w3_ref, b3_ref,
                 a_dim, bf16_act)
    mu_ref[...] = mu

    # Gaussian log-prob; exp(-log_std) and the additive constant are hoisted
    # to the wrapper (inv_std_ref is (1, A) VMEM, const_ref is an SMEM scalar).
    diff = (action_ref[...] - mu) * inv_std_ref[...]                   # (blk, A)
    logp_ref[...] = const_ref[0] - 0.5 * jnp.sum(diff * diff, axis=1,
                                                 keepdims=True)        # (blk, 1)


def _forward_kernel(state_ref,
                    w1_ref, b1_ref, w2_ref, b2_ref, w3_ref, b3_ref,
                    mu_ref, *, bf16_act):
    mu_ref[...] = _mlp_mu(state_ref, w1_ref, b1_ref, w2_ref, b2_ref,
                          w3_ref, b3_ref, mu_ref.shape[1], bf16_act)


# ----------------------------------------------------------------------------
# Wrapper helpers
# ----------------------------------------------------------------------------
def _batch_block(B, block_b):
    # At least 2 grid tiles for non-trivial batches (v7x has 2 TensorCores),
    # sublane-aligned (multiple of 8), capped by block_b.
    bb_cap = _round_up(max(pl.cdiv(B, 2), 1), 8)
    bb = max(8, min(block_b, bb_cap))
    Bp = _round_up(B, bb)
    return bb, Bp


def _prep_weights(params):
    w1, b1, w2, b2, w3, b3, log_std = params
    F2, A = w3.shape
    w1b = w1.astype(jnp.bfloat16)
    w2b = w2.astype(jnp.bfloat16)
    # Zero-pad fc3 to 128 output lanes (lane-dense MXU result; extra lanes
    # are never read -- we slice to A before bias/sigmoid in-kernel).
    w3b = jnp.zeros((F2, _W3_PAD), jnp.bfloat16).at[:, :A].set(
        w3.astype(jnp.bfloat16))
    return w1b, b1, w2b, b2, w3b, b3, log_std


def _compiler_params(bb):
    # v5e's scoped-VMEM default is 16 MiB; raise it for big blocks.
    vmem = 48 * 1024 * 1024 if bb >= 2048 else None
    return pltpu.CompilerParams(dimension_semantics=("parallel",),
                                vmem_limit_bytes=vmem)


# ----------------------------------------------------------------------------
# Public entry points
# ----------------------------------------------------------------------------
def evaluate_action_pallas(state, action, params, *, block_b=4096):
    """state: (B, S) f32, action: (B, A) f32.
    Returns (log_prob (B,), mu (B, A)); mu is the module's forward() output."""
    B, S = state.shape
    A = action.shape[1]
    w1b, b1, w2b, b2, w3b, b3, log_std = _prep_weights(params)
    F1 = w1b.shape[1]
    F2 = w2b.shape[1]

    # Hoist grid-invariant log-prob pieces out of the kernel.
    log_std = log_std.reshape(1, A).astype(jnp.float32)
    inv_std = jnp.exp(-log_std)                                        # (1, A)
    const = (-(jnp.sum(log_std) + 0.5 * A * _LOG_2PI)).reshape(1)      # (1,)
    const = const.astype(jnp.float32)

    bb, Bp = _batch_block(B, block_b)
    if Bp != B:
        state = jnp.pad(state, ((0, Bp - B), (0, 0)))
        action = jnp.pad(action, ((0, Bp - B), (0, 0)))
    grid = (Bp // bb,)

    def tile(cols):
        return pl.BlockSpec((bb, cols), lambda i: (i, 0))

    def resident(rows, cols):
        return pl.BlockSpec((rows, cols), lambda i: (0, 0))

    mu_out, logp_out = pl.pallas_call(
        functools.partial(_policy_kernel, bf16_act=_use_bf16_activations()),
        grid=grid,
        out_shape=(jax.ShapeDtypeStruct((Bp, A), jnp.float32),
                   jax.ShapeDtypeStruct((Bp, 1), jnp.float32)),
        in_specs=[
            tile(S),                  # state  (pipelined over the grid)
            tile(A),                  # action (pipelined over the grid)
            resident(S, F1),          # w1 (bf16, VMEM resident)
            resident(1, F1),          # b1
            resident(F1, F2),         # w2 (bf16, VMEM resident)
            resident(1, F2),          # b2
            resident(F2, _W3_PAD),    # w3 padded (bf16, VMEM resident)
            resident(1, A),           # b3
            resident(1, A),           # inv_std
            pl.BlockSpec(memory_space=pltpu.MemorySpace.SMEM),  # const scalar
        ],
        out_specs=(pl.BlockSpec((bb, A), lambda i: (i, 0)),
                   pl.BlockSpec((bb, 1), lambda i: (i, 0))),
        compiler_params=_compiler_params(bb),
    )(state, action, w1b, b1, w2b, b2, w3b, b3, inv_std, const)

    return logp_out[:B, 0], mu_out[:B]


def forward_pallas(state, params, *, block_b=4096):
    """Exact forward() of MLP_Gaussian_URLLC: returns mu only (no action DMA,
    no log-prob work)."""
    B, S = state.shape
    w1b, b1, w2b, b2, w3b, b3, _ = _prep_weights(params)
    F1 = w1b.shape[1]
    F2 = w2b.shape[1]
    A = b3.shape[1]

    bb, Bp = _batch_block(B, block_b)
    if Bp != B:
        state = jnp.pad(state, ((0, Bp - B), (0, 0)))
    grid = (Bp // bb,)

    def resident(rows, cols):
        return pl.BlockSpec((rows, cols), lambda i: (0, 0))

    mu_out = pl.pallas_call(
        functools.partial(_forward_kernel, bf16_act=_use_bf16_activations()),
        grid=grid,
        out_shape=jax.ShapeDtypeStruct((Bp, A), jnp.float32),
        in_specs=[
            pl.BlockSpec((bb, S), lambda i: (i, 0)),   # state
            resident(S, F1), resident(1, F1),          # w1, b1
            resident(F1, F2), resident(1, F2),         # w2, b2
            resident(F2, _W3_PAD), resident(1, A),     # w3 padded, b3
        ],
        out_specs=pl.BlockSpec((bb, A), lambda i: (i, 0)),
        compiler_params=_compiler_params(bb),
    )(state, w1b, b1, w2b, b2, w3b, b3)

    return mu_out[:B]


# ----------------------------------------------------------------------------
# Deterministic parameter init (mirrors MLP_Gaussian_URLLC.__init__)
# ----------------------------------------------------------------------------
def init_params(key, state_dim, action_dim, fc1_dim=128, fc2_dim=128):
    k1, k2, k3 = jax.random.split(key, 3)
    ortho = jax.nn.initializers.orthogonal(scale=math.sqrt(2.0))
    # PyTorch Linear stores W as (out, in); we store the transpose (in, out)
    # so the kernel computes x @ W == x @ W_pt^T.
    w1 = ortho(k1, (state_dim, fc1_dim), jnp.float32)
    b1 = jnp.zeros((1, fc1_dim), jnp.float32)
    w2 = ortho(k2, (fc1_dim, fc2_dim), jnp.float32)
    b2 = jnp.zeros((1, fc2_dim), jnp.float32)
    w3 = ortho(k3, (fc2_dim, action_dim), jnp.float32)
    b3 = jnp.zeros((1, action_dim), jnp.float32)
    log_std = -0.5 * jnp.ones((1, action_dim), jnp.float32)
    return (w1, b1, w2, b2, w3, b3, log_std)


# ----------------------------------------------------------------------------
# Pure-JAX f32 reference
# ----------------------------------------------------------------------------
def _reference(state, action, params):
    w1, b1, w2, b2, w3, b3, log_std = params
    h1 = jnp.tanh(state @ w1 + b1)
    h2 = jnp.tanh(h1 @ w2 + b2)
    mu = jax.nn.sigmoid(h2 @ w3 + b3)
    std = jnp.exp(log_std)
    var = std * std
    logp = -((action - mu) ** 2) / (2.0 * var) - log_std - 0.5 * _LOG_2PI
    return jnp.sum(logp, axis=1), mu


if __name__ == "__main__":
    # Shapes consistent with the module: state_dim=16, action_dim=8,
    # batch = num_new_data = 8, hidden dims fixed at 128.
    state_dim, action_dim, num_new_data = 16, 8, 8

    key = jax.random.PRNGKey(0)
    kp, ks, ka = jax.random.split(key, 3)

    params = init_params(kp, state_dim, action_dim)
    state = jax.random.normal(ks, (num_new_data, state_dim), jnp.float32)
    action = jax.random.uniform(ka, (num_new_data, action_dim), jnp.float32)

    log_prob, mu = evaluate_action_pallas(state, action, params)
    mu = jax.block_until_ready(mu)
    log_prob = jax.block_until_ready(log_prob)

    ref_logp, ref_mu = _reference(state, action, params)
    # bf16 MXU inputs / activations -> loosened tolerance vs. pure-f32 ref.
    assert jnp.allclose(mu, ref_mu, atol=5e-2, rtol=5e-2), \
        float(jnp.max(jnp.abs(mu - ref_mu)))
    assert jnp.allclose(log_prob, ref_logp, atol=2e-1, rtol=5e-2), \
        float(jnp.max(jnp.abs(log_prob - ref_logp)))

    # forward()-only entry point (dedicated kernel, no log-prob work).
    mu_fwd = jax.block_until_ready(forward_pallas(state, params))
    assert jnp.allclose(mu_fwd, mu, atol=1e-6), \
        float(jnp.max(jnp.abs(mu_fwd - mu)))

    # Exercise the padding / multi-tile path (B not a multiple of 8).
    state_big = jax.random.normal(ks, (37, state_dim), jnp.float32)
    action_big = jax.random.uniform(ka, (37, action_dim), jnp.float32)
    lp_big, mu_big = evaluate_action_pallas(state_big, action_big, params)
    mu_big = jax.block_until_ready(mu_big)
    ref_lp_big, ref_mu_big = _reference(state_big, action_big, params)
    assert jnp.allclose(mu_big, ref_mu_big, atol=5e-2, rtol=5e-2)
    assert jnp.allclose(lp_big, ref_lp_big, atol=2e-1, rtol=5e-2)

    mu_fwd_big = jax.block_until_ready(forward_pallas(state_big, params))
    assert jnp.allclose(mu_fwd_big, mu_big, atol=1e-6)

    print("KERNEL_OK")
</pallas_src>

<mosaic_0001>
module attributes {stable_mosaic.version = 11 : i64} {
  func.func @_policy_kernel(%arg0: i32, %arg1: memref<8x16xf32, #tpu.memory_space<vmem>>, %arg2: memref<8x8xf32, #tpu.memory_space<vmem>>, %arg3: memref<16x128xbf16, #tpu.memory_space<vmem>>, %arg4: memref<1x128xf32, #tpu.memory_space<vmem>>, %arg5: memref<128x128xbf16, #tpu.memory_space<vmem>>, %arg6: memref<1x128xf32, #tpu.memory_space<vmem>>, %arg7: memref<128x128xbf16, #tpu.memory_space<vmem>>, %arg8: memref<1x8xf32, #tpu.memory_space<vmem>>, %arg9: memref<1x8xf32, #tpu.memory_space<vmem>>, %arg10: memref<1xf32, #tpu.memory_space<smem>>, %arg11: memref<8x8xf32, #tpu.memory_space<vmem>>, %arg12: memref<8x1xf32, #tpu.memory_space<vmem>>) attributes {dimension_semantics = [#tpu.dimension_semantics<parallel>], iteration_bounds = array<i64: 1>, scalar_prefetch = 0 : i64, scratch_operands = 0 : i64, tpu.core_type = #tpu.core_type<tc>, window_params = [{transform_indices = @transform_0, window_bounds = array<i64: 8, 16>}, {transform_indices = @transform_1, window_bounds = array<i64: 8, 8>}, {pipeline_mode = #tpu.pipeline_mode<synchronous>, transform_indices = @transform_2, window_bounds = array<i64: 16, 128>}, {pipeline_mode = #tpu.pipeline_mode<synchronous>, transform_indices = @transform_3, window_bounds = array<i64: 1, 128>}, {pipeline_mode = #tpu.pipeline_mode<synchronous>, transform_indices = @transform_4, window_bounds = array<i64: 128, 128>}, {pipeline_mode = #tpu.pipeline_mode<synchronous>, transform_indices = @transform_5, window_bounds = array<i64: 1, 128>}, {pipeline_mode = #tpu.pipeline_mode<synchronous>, transform_indices = @transform_6, window_bounds = array<i64: 128, 128>}, {pipeline_mode = #tpu.pipeline_mode<synchronous>, transform_indices = @transform_7, window_bounds = array<i64: 1, 8>}, {pipeline_mode = #tpu.pipeline_mode<synchronous>, transform_indices = @transform_8, window_bounds = array<i64: 1, 8>}, {transform_indices = @transform_9, window_bounds = array<i64: 1>}, {transform_indices = @transform_10, window_bounds = array<i64: 8, 8>}, {transform_indices = @transform_11, window_bounds = array<i64: 8, 1>}]} {
    %c0 = arith.constant 0 : index
    %c0_0 = arith.constant 0 : index
    %0 = vector.load %arg1[%c0, %c0_0] : memref<8x16xf32, #tpu.memory_space<vmem>>, vector<8x16xf32>
    %1 = arith.truncf %0 : vector<8x16xf32> to vector<8x16xbf16>
    %c0_1 = arith.constant 0 : index
    %c0_2 = arith.constant 0 : index
    %2 = vector.load %arg3[%c0_1, %c0_2] : memref<16x128xbf16, #tpu.memory_space<vmem>>, vector<16x128xbf16>
    %cst = arith.constant dense<0.000000e+00> : vector<8x128xf32>
    %3 = tpu.matmul %1, %2, %cst {dimension_numbers = #tpu.dot_dimension_numbers<[1], [0], [0], [1], [0, 0, 1, 1], [], []>} : vector<8x16xbf16>, vector<16x128xbf16>, vector<8x128xf32> -> vector<8x128xf32>
    %c0_3 = arith.constant 0 : index
    %c0_4 = arith.constant 0 : index
    %4 = vector.load %arg4[%c0_3, %c0_4] : memref<1x128xf32, #tpu.memory_space<vmem>>, vector<1x128xf32>
    %5 = vector.broadcast %4 : vector<1x128xf32> to vector<8x128xf32>
    %6 = arith.addf %3, %5 : vector<8x128xf32>
    %7 = arith.truncf %6 : vector<8x128xf32> to vector<8x128xbf16>
    %8 = math.tanh %7 : vector<8x128xbf16>
    %c0_5 = arith.constant 0 : index
    %c0_6 = arith.constant 0 : index
    %9 = vector.load %arg5[%c0_5, %c0_6] : memref<128x128xbf16, #tpu.memory_space<vmem>>, vector<128x128xbf16>
    %cst_7 = arith.constant dense<0.000000e+00> : vector<8x128xf32>
    %10 = tpu.matmul %8, %9, %cst_7 {dimension_numbers = #tpu.dot_dimension_numbers<[1], [0], [0], [1], [0, 0, 1, 1], [], []>} : vector<8x128xbf16>, vector<128x128xbf16>, vector<8x128xf32> -> vector<8x128xf32>
    %c0_8 = arith.constant 0 : index
    %c0_9 = arith.constant 0 : index
    %11 = vector.load %arg6[%c0_8, %c0_9] : memref<1x128xf32, #tpu.memory_space<vmem>>, vector<1x128xf32>
    %12 = vector.broadcast %11 : vector<1x128xf32> to vector<8x128xf32>
    %13 = arith.addf %10, %12 : vector<8x128xf32>
    %14 = arith.truncf %13 : vector<8x128xf32> to vector<8x128xbf16>
    %15 = math.tanh %14 : vector<8x128xbf16>
    %c0_10 = arith.constant 0 : index
    %c0_11 = arith.constant 0 : index
    %16 = vector.load %arg7[%c0_10, %c0_11] : memref<128x128xbf16, #tpu.memory_space<vmem>>, vector<128x128xbf16>
    %cst_12 = arith.constant dense<0.000000e+00> : vector<8x128xf32>
    %17 = tpu.matmul %15, %16, %cst_12 {dimension_numbers = #tpu.dot_dimension_numbers<[1], [0], [0], [1], [0, 0, 1, 1], [], []>} : vector<8x128xbf16>, vector<128x128xbf16>, vector<8x128xf32> -> vector<8x128xf32>
    %18 = vector.extract_strided_slice %17 {offsets = [0, 0], sizes = [8, 8], strides = [1, 1]} : vector<8x128xf32> to vector<8x8xf32>
    %c0_13 = arith.constant 0 : index
    %c0_14 = arith.constant 0 : index
    %19 = vector.load %arg8[%c0_13, %c0_14] : memref<1x8xf32, #tpu.memory_space<vmem>>, vector<1x8xf32>
    %20 = vector.broadcast %19 : vector<1x8xf32> to vector<8x8xf32>
    %21 = arith.addf %18, %20 : vector<8x8xf32>
    %22 = arith.negf %21 : vector<8x8xf32>
    %23 = math.exp %22 : vector<8x8xf32>
    %cst_15 = arith.constant 1.000000e+00 : f32
    %24 = vector.broadcast %cst_15 : f32 to vector<8x8xf32>
    %25 = arith.addf %24, %23 : vector<8x8xf32>
    %26 = arith.divf %24, %25 : vector<8x8xf32>
    %c0_16 = arith.constant 0 : index
    %c0_17 = arith.constant 0 : index
    %27 = vector.load %arg11[%c0_16, %c0_17] : memref<8x8xf32, #tpu.memory_space<vmem>>, vector<8x8xf32>
    tpu.vector_store %arg11[%c0_16, %c0_17], %26 {strides = array<i32>} : memref<8x8xf32, #tpu.memory_space<vmem>>, vector<8x8xf32>,
    %c0_18 = arith.constant 0 : index
    %c0_19 = arith.constant 0 : index
    %28 = vector.load %arg2[%c0_18, %c0_19] : memref<8x8xf32, #tpu.memory_space<vmem>>, vector<8x8xf32>
    %29 = arith.subf %28, %26 : vector<8x8xf32>
    %c0_20 = arith.constant 0 : index
    %c0_21 = arith.constant 0 : index
    %30 = vector.load %arg9[%c0_20, %c0_21] : memref<1x8xf32, #tpu.memory_space<vmem>>, vector<1x8xf32>
    %31 = vector.broadcast %30 : vector<1x8xf32> to vector<8x8xf32>
    %32 = arith.mulf %29, %31 : vector<8x8xf32>
    %c0_22 = arith.constant 0 : index
    %33 = memref.load %arg10[%c0_22] : memref<1xf32, #tpu.memory_space<smem>>
    %34 = arith.mulf %32, %32 : vector<8x8xf32>
    %cst_23 = arith.constant dense<0.000000e+00> : vector<8xf32>
    %35 = vector.multi_reduction <add>, %34, %cst_23 [1] : vector<8x8xf32> to vector<8xf32>
    %36 = vector.shape_cast %35 : vector<8xf32> to vector<8x1xf32>
    %cst_24 = arith.constant 5.000000e-01 : f32
    %37 = vector.broadcast %cst_24 : f32 to vector<8x1xf32>
    %38 = arith.mulf %37, %36 : vector<8x1xf32>
    %39 = vector.broadcast %33 : f32 to vector<8x1xf32>
    %40 = arith.subf %39, %38 : vector<8x1xf32>
    %c0_25 = arith.constant 0 : index
    %c0_26 = arith.constant 0 : index
    %41 = vector.load %arg12[%c0_25, %c0_26] : memref<8x1xf32, #tpu.memory_space<vmem>>, vector<8x1xf32>
    tpu.vector_store %arg12[%c0_25, %c0_26], %40 {strides = array<i32>} : memref<8x1xf32, #tpu.memory_space<vmem>>, vector<8x1xf32>,
    return
  }
  func.func @transform_0(%arg0: i32) -> (i32, i32) {
    %c0_i32 = arith.constant 0 : i32
    %c0_i32_0 = arith.constant 0 : i32
    return %arg0, %c0_i32 : i32, i32
  }
  func.func @transform_1(%arg0: i32) -> (i32, i32) {
    %c0_i32 = arith.constant 0 : i32
    %c0_i32_0 = arith.constant 0 : i32
    return %arg0, %c0_i32 : i32, i32
  }
  func.func @transform_2(%arg0: i32) -> (i32, i32) {
    %c0_i32 = arith.constant 0 : i32
    %c0_i32_0 = arith.constant 0 : i32
    %c0_i32_1 = arith.constant 0 : i32
    return %c0_i32, %c0_i32_0 : i32, i32
  }
  func.func @transform_3(%arg0: i32) -> (i32, i32) {
    %c0_i32 = arith.constant 0 : i32
    %c0_i32_0 = arith.constant 0 : i32
    %c0_i32_1 = arith.constant 0 : i32
    return %c0_i32, %c0_i32_0 : i32, i32
  }
  func.func @transform_4(%arg0: i32) -> (i32, i32) {
    %c0_i32 = arith.constant 0 : i32
    %c0_i32_0 = arith.constant 0 : i32
    %c0_i32_1 = arith.constant 0 : i32
    return %c0_i32, %c0_i32_0 : i32, i32
  }
  func.func @transform_5(%arg0: i32) -> (i32, i32) {
    %c0_i32 = arith.constant 0 : i32
    %c0_i32_0 = arith.constant 0 : i32
    %c0_i32_1 = arith.constant 0 : i32
    return %c0_i32, %c0_i32_0 : i32, i32
  }
  func.func @transform_6(%arg0: i32) -> (i32, i32) {
    %c0_i32 = arith.constant 0 : i32
    %c0_i32_0 = arith.constant 0 : i32
    %c0_i32_1 = arith.constant 0 : i32
    return %c0_i32, %c0_i32_0 : i32, i32
  }
  func.func @transform_7(%arg0: i32) -> (i32, i32) {
    %c0_i32 = arith.constant 0 : i32
    %c0_i32_0 = arith.constant 0 : i32
    %c0_i32_1 = arith.constant 0 : i32
    return %c0_i32, %c0_i32_0 : i32, i32
  }
  func.func @transform_8(%arg0: i32) -> (i32, i32) {
    %c0_i32 = arith.constant 0 : i32
    %c0_i32_0 = arith.constant 0 : i32
    %c0_i32_1 = arith.constant 0 : i32
    return %c0_i32, %c0_i32_0 : i32, i32
  }
  func.func @transform_9(%arg0: i32) -> i32 {
    %c0_i32 = arith.constant 0 : i32
    %c0_i32_0 = arith.constant 0 : i32
    return %c0_i32 : i32
  }
  func.func @transform_10(%arg0: i32) -> (i32, i32) {
    %c0_i32 = arith.constant 0 : i32
    %c0_i32_0 = arith.constant 0 : i32
    return %arg0, %c0_i32 : i32, i32
  }
  func.func @transform_11(%arg0: i32) -> (i32, i32) {
    %c0_i32 = arith.constant 0 : i32
    %c0_i32_0 = arith.constant 0 : i32
    return %arg0, %c0_i32 : i32, i32
  }
}

</mosaic_0001>

<bundles_post_ra>
// kernel: tpu_custom_call.1
= control target key start
LH: loop header
LB: loop body
LE: loop exit
PB: predicated region body
PF: predicated region fallthrough
CT: control target
= control target key end

     0   :  { %18 = vsyncpa [#allocation4], 0  ;;  %s842_s0 = inlined_call_operand.hbm [shape: f32[8,16], index: 0, kind: input, shape index: {}]   ;;  %s843_s1 = inlined_call_operand.hbm [shape: f32[8,8], index: 1, kind: input, shape index: {}]   ;;  %s844_s2 = inlined_call_operand.vmem [shape: bf16[16,128], index: 2, kind: input, shape index: {}]   ;;  %s845_s3 = inlined_call_operand.vmem [shape: f32[1,128], index: 3, kind: input, shape index: {}]   ;;  %s846_s4 = inlined_call_operand.hbm [shape: bf16[128,128], index: 4, kind: input, shape index: {}]   ;;  %s847_s5 = inlined_call_operand.vmem [shape: f32[1,128], index: 5, kind: input, shape index: {}]   ;;  %s848_s6 = inlined_call_operand.hbm [shape: bf16[128,128], index: 6, kind: input, shape index: {}]   ;;  %s849_s7 = inlined_call_operand.vmem [shape: f32[1,8], index: 7, kind: input, shape index: {}]   ;;  %s850_s8 = inlined_call_operand.vmem [shape: f32[1,8], index: 8, kind: input, shape index: {}]   ;;  %s851_s9 = inlined_call_operand.<no memory space> [shape: f32[1], index: 9, kind: input, shape index: {}]   ;;  %s852_s10 = inlined_call_operand.hbm [shape: f32[8,8], index: 10, kind: output, shape index: {0}]   ;;  %s853_s11 = inlined_call_operand.vmem [shape: f32[8,1], index: 11, kind: output, shape index: {1}]  }
   0x1   :  { %19 = vsyncpa [#allocation7], 0 }
   0x2   :  { %20 = vsyncpa [#allocation10], 0 }
   0x3   :  { %21 = vsyncpa [#allocation5], 0  ;;  %s669_s17 = smov [#allocation6]   ;;  %s670_s19 = smov [#allocation3]  }
   0x4   :  { %s38_s18 = sshll.u32 %s669_s17, 4  ;;  %s28_s20 = sshll.u32 %s670_s19, 4  ;;  %s39_s18 = int_to_ptr.vmem [resolvable:$true] %s38_s18  ;;  %s29_s20 = int_to_ptr.vmem [resolvable:$true] %s28_s20 }
   0x5   :  { %s551_s23 = scalar_lea.hbm %s843_s1, 128 }
   0x6   :  { %p552_p0 = scmp.ne.s32.totalorder %s843_s1, %s551_s23  ;;  %p555_p1 = scmp.lt.u32.totalorder %s551_s23, %s843_s1 }
   0x8   :  { %p557_p2 = pnand %p555_p1, %p552_p0 }
   0xa   :  { %560 = shalt.err (!%p557_p2)
}
   0xb   :  { %s561_s28 = scalar_lea.vmem %s39_s18, 128  ;;  %p566_p4 = scmp.lt.s32.totalorder %s39_s18, %s39_s18 }
   0xc   :  { %p562_p3 = scmp.ne.s32.totalorder %s39_s18, %s561_s28  ;;  %p567_p5 = scmp.lt.s32.totalorder %s561_s28, %s561_s28 }
   0xe   :  { %p568_p6 = por %p567_p5, %p566_p4 }
  0x10   :  { %p569_p7 = pnand %p568_p6, %p562_p3 }
  0x12   :  { %572 = shalt.err (!%p569_p7)
}
  0x13   :  { %41 = dma.hbm_to_vmem [thread:$0]  %s843_s1, 128, %s39_s18, [#allocation7]  }
  0x14   :  { %s573_s14 = scalar_lea.hbm %s842_s0, 128 }
  0x15   :  { %p574_p8 = scmp.ne.s32.totalorder %s842_s0, %s573_s14  ;;  %p577_p9 = scmp.lt.u32.totalorder %s573_s14, %s842_s0 }
  0x17   :  { %p579_p10 = pnand %p577_p9, %p574_p8 }
  0x19   :  { %582 = shalt.err (!%p579_p10)
}
  0x1a   :  { %s583_s21 = scalar_lea.vmem %s29_s20, 128  ;;  %p588_p12 = scmp.lt.s32.totalorder %s29_s20, %s29_s20 }
  0x1b   :  { %p584_p11 = scmp.ne.s32.totalorder %s29_s20, %s583_s21  ;;  %p589_p13 = scmp.lt.s32.totalorder %s583_s21, %s583_s21 }
  0x1d   :  { %p590_p0 = por %p589_p13, %p588_p12 }
  0x1f   :  { %p591_p1 = pnand %p590_p0, %p584_p11 }
  0x21   :  { %594 = shalt.err (!%p591_p1)
}
  0x22   :  { %31 = dma.hbm_to_vmem [thread:$0]  %s842_s0, 128, %s29_s20, [#allocation4]  }
  0x23   :  { %s671_s22 = smov [#allocation8]   ;;  %s595_s26 = scalar_lea.hbm %s846_s4, 1024 }
  0x24   :  { %s51_s23 = sshll.u32 %s671_s22, 4  ;;  %p596_p2 = scmp.ne.s32.totalorder %s846_s4, %s595_s26  ;;  %s52_s23 = int_to_ptr.vmem [resolvable:$true] %s51_s23 }
  0x25   :  { %p599_p3 = scmp.lt.u32.totalorder %s595_s26, %s846_s4 }
  0x27   :  { %p601_p4 = pnand %p599_p3, %p596_p2 }
  0x29   :  { %604 = shalt.err (!%p601_p4)
}
  0x2a   :  { %s605_s12 = scalar_lea.vmem %s52_s23, 1024  ;;  %p610_p6 = scmp.lt.s32.totalorder %s52_s23, %s52_s23 }
  0x2b   :  { %p606_p5 = scmp.ne.s32.totalorder %s52_s23, %s605_s12  ;;  %p611_p7 = scmp.lt.s32.totalorder %s605_s12, %s605_s12 }
  0x2d   :  { %p612_p8 = por %p611_p7, %p610_p6 }
  0x2f   :  { %p613_p9 = pnand %p612_p8, %p606_p5 }
  0x31   :  { %616 = shalt.err (!%p613_p9)
}
  0x32   :  { %s672_s0 = smov 64   ;;  %s673_s20 = smov 4  }
  0x33   :  { %57 = dma.hbm_to_vmem [thread:$0]  %s846_s4, 1024, %s52_s23, [#allocation7], %s672_s0, %s672_s0, %s673_s20  }
  0x34   :  { %s674_s15 = smov [#allocation9]   ;;  %s617_s21 = scalar_lea.hbm %s848_s6, 1024 }
  0x35   :  { %s65_s16 = sshll.u32 %s674_s15, 4  ;;  %p618_p10 = scmp.ne.s32.totalorder %s848_s6, %s617_s21  ;;  %s66_s16 = int_to_ptr.vmem [resolvable:$true] %s65_s16 }
  0x36   :  { %p621_p11 = scmp.lt.u32.totalorder %s617_s21, %s848_s6 }
  0x38   :  { %p623_p12 = pnand %p621_p11, %p618_p10 }
  0x3a   :  { %626 = shalt.err (!%p623_p12)
}
  0x3b   :  { %s627_s25 = scalar_lea.vmem %s66_s16, 1024  ;;  %p632_p0 = scmp.lt.s32.totalorder %s66_s16, %s66_s16 }
  0x3c   :  { %p628_p13 = scmp.ne.s32.totalorder %s66_s16, %s627_s25  ;;  %p633_p1 = scmp.lt.s32.totalorder %s627_s25, %s627_s25 }
  0x3e   :  { %p634_p2 = por %p633_p1, %p632_p0 }
  0x40   :  { %p635_p3 = pnand %p634_p2, %p628_p13 }
  0x42   :  { %638 = shalt.err (!%p635_p3)
}
  0x43   :  { %71 = dma.hbm_to_vmem [thread:$0]  %s848_s6, 1024, %s66_s16, [#allocation10], %s672_s0, %s672_s0, %s673_s20  }
  0x44   :  { %661 = dma.done.wait [#allocation4], 128  }
  0x45   :  { %662 = vsyncadd [#allocation4], 4294967168 }
  0x46   :  { %663 = dma.done.wait [#allocation7], 1152  }
  0x47   :  { %664 = vsyncadd [#allocation7], 4294966144 }
  0x48   :  { %665 = dma.done.wait [#allocation10], 1024  }
  0x49   :  { %666 = vsyncadd [#allocation10], 4294966272  ;;  %v675_v0 = vmov 0.0   ;;  %vm676_vm0 = vmmov 0   ;;  %v526_v1 = vld [vmem:[%s844_s2] sm:$0xff]   ;;  %vm108_vm1 = vcmask 130048  }
  0x4a   :  { %471 = vmatprep.subr.bf16.mxu0 %v675_v0  ;;  %473 = vmatprep.mubr.msk.bf16.mxu0 %vm676_vm0, %v675_v0  ;;  %v91_v2 = vld [vmem:[#allocation3] sm:$0xff]  ;;  %v527_v4 = vld [vmem:[#allocation8] sm:$0xff]   ;;  %v528_v5 = vld [vmem:[#allocation8 + $0x8] sm:$0xff]   ;;  %vm385_vm2 = vcmask 64512  }
  0x4b   :  { %477 = vmatprep.subr.bf16.mxu1 %v675_v0  ;;  %493 = vmatprep.mubr.msk.bf16.mxu1 %vm676_vm0, %v675_v0  ;;  %v92_v3 = vpack.c.bf16 %v91_v2, %v91_v2  ;;  %v529_v6 = vld [vmem:[#allocation8 + $0x10] sm:$0xff]   ;;  %v530_v7 = vld [vmem:[#allocation8 + $0x18] sm:$0xff]   ;;  %v531_v8 = vld [vmem:[#allocation8 + $0x20] sm:$0xff]  }
  0x4c   :  { %472 = vmatpush3.bf16.msra.mxu0 %v526_v1  ;;  %478 = vmatpush3.bf16.msra.mxu1 %v527_v4  ;;  %v532_v9 = vld [vmem:[#allocation8 + $0x28] sm:$0xff]   ;;  %v533_v10 = vld [vmem:[#allocation8 + $0x30] sm:$0xff]   ;;  %v534_v11 = vld [vmem:[#allocation8 + $0x38] sm:$0xff]  }
  0x4d   :  { %497 = vmatprep.subr.bf16.mxu0 %v675_v0  ;;  %479 = vmatprep.subr.bf16.mxu1 %v675_v0  ;;  %v535_v12 = vld [vmem:[#allocation9] sm:$0xff]   ;;  %v536_v13 = vld [vmem:[#allocation9 + $0x8] sm:$0xff]   ;;  %v537_v14 = vld [vmem:[#allocation9 + $0x10] sm:$0xff]  }
  0x4e   :  { %v538_v15 = vld [vmem:[#allocation9 + $0x18] sm:$0xff]   ;;  %v428_v16 = vld [vmem:[%s845_s3] ss:$0 sm:$0xff]  ;;  %v539_v24 = vld [vmem:[#allocation9 + $0x20] sm:$0xff]  }
  0x4f   :  { %474 = vmatmul.mubr.msk.bf16.vlgmr.msra.gmra.mrb[0].mxu0 %vm108_vm1, %v92_v3  ;;  %v540_v25 = vld [vmem:[#allocation9 + $0x28] sm:$0xff]   ;;  %v541_v26 = vld [vmem:[#allocation9 + $0x30] sm:$0xff]   ;;  %v542_v27 = vld [vmem:[#allocation9 + $0x38] sm:$0xff]  }
  0x50   :  { %513 = vmatprep.mubr.msk.bf16.mxu0 %vm676_vm0, %v675_v0  ;;  %480 = vmatpush3.bf16.msra.mxu1 %v528_v5  ;;  %v431_v28 = vld [vmem:[%s847_s5] ss:$0 sm:$0xff]  ;;  %v387_v45 = vld [vmem:[#allocation6] sm:$0xff] }
  0x51   :  { %481 = vmatprep.subr.bf16.mxu1 %v675_v0  ;;  %498 = vmatpush3.bf16.msra.mxu0 %v535_v12  ;;  %v448_v36 = vld [vmem:[%s849_s7] ss:$0 sm:$0xff]  ;;  %s677_s7 = smov [#allocation11]  }
  0x52   :  { %499 = vmatprep.subr.bf16.mxu0 %v675_v0  ;;  %v450_v47 = vld [vmem:[%s850_s8] ss:$0 sm:$0xff]  ;;  %s413_s0 = sshll.u32 %s677_s7, 4  ;;  %s414_s0 = int_to_ptr.vmem [resolvable:$true] %s413_s0 }
  0x53   :  { %s639_s20 = scalar_lea.vmem %s414_s0, 128  ;;  %p644_p5 = scmp.lt.s32.totalorder %s414_s0, %s414_s0 }
  0x54   :  { %482 = vmatpush3.bf16.msra.mxu1 %v529_v6  ;;  %p640_p4 = scmp.ne.s32.totalorder %s414_s0, %s639_s20  ;;  %p645_p6 = scmp.lt.s32.totalorder %s639_s20, %s639_s20 }
  0x55   :  { %483 = vmatprep.subr.bf16.mxu1 %v675_v0  ;;  %500 = vmatpush3.bf16.msra.mxu0 %v536_v13 }
  0x56   :  { %501 = vmatprep.subr.bf16.mxu0 %v675_v0  ;;  %p646_p7 = por %p645_p6, %p644_p5 }
  0x58   :  { %484 = vmatpush3.bf16.msra.mxu1 %v530_v7  ;;  %p647_p8 = pnand %p646_p7, %p640_p4 }
  0x59   :  { %485 = vmatprep.subr.bf16.mxu1 %v675_v0  ;;  %502 = vmatpush3.bf16.msra.mxu0 %v537_v14 }
  0x5a   :  { %503 = vmatprep.subr.bf16.mxu0 %v675_v0 }
  0x5c   :  { %486 = vmatpush3.bf16.msra.mxu1 %v531_v8 }
  0x5d   :  { %487 = vmatprep.subr.bf16.mxu1 %v675_v0  ;;  %504 = vmatpush3.bf16.msra.mxu0 %v538_v15 }
  0x5e   :  { %505 = vmatprep.subr.bf16.mxu0 %v675_v0 }
  0x60   :  { %488 = vmatpush3.bf16.msra.mxu1 %v532_v9 }
  0x61   :  { %489 = vmatprep.subr.bf16.mxu1 %v675_v0  ;;  %506 = vmatpush3.bf16.msra.mxu0 %v539_v24 }
  0x62   :  { %507 = vmatprep.subr.bf16.mxu0 %v675_v0 }
  0x64   :  { %490 = vmatpush3.bf16.msra.mxu1 %v533_v10 }
  0x65   :  { %491 = vmatprep.subr.bf16.mxu1 %v675_v0  ;;  %508 = vmatpush3.bf16.msra.mxu0 %v540_v25 }
  0x66   :  { %509 = vmatprep.subr.bf16.mxu0 %v675_v0 }
  0x68   :  { %492 = vmatpush3.bf16.msra.mxu1 %v534_v11 }
  0x69   :  { %510 = vmatpush3.bf16.msra.mxu0 %v541_v26 }
  0x6a   :  { %511 = vmatprep.subr.bf16.mxu0 %v675_v0 }
  0x6d   :  { %512 = vmatpush3.bf16.msra.mxu0 %v542_v27 }
 0x122   :  { %v146_v17 = vpop.f32.mrb[0].mxu0 }
 0x123   :  { %v147_v18 = vadd.f32 %v428_v16, %v146_v17  ;;  %v475_v19 = vpop.f32.mrb[1].mxu0 }
 0x124   :  { %v149_v20 = vpop.f32.mrb[2].mxu0 }
 0x125   :  { %v152_v21 = vpack.c.bf16 %v147_v18, %v147_v18  ;;  %v476_v22 = vpop.f32.mrb[3].mxu0 }
 0x127   :  { %543 = vtanh.bf16 %v152_v21 }
 0x132   :  { %v544_v23 = vpop.eup %543 }
 0x133   :  { %494 = vmatmul.mubr.bf16.vlgmr.msra.gmra.mrb[0].mxu1 %v544_v23 }
 0x206   :  { %v259_v29 = vpop.f32.mrb[0].mxu1 }
 0x207   :  { %v260_v30 = vadd.f32 %v431_v28, %v259_v29  ;;  %v495_v31 = vpop.f32.mrb[1].mxu1 }
 0x208   :  { %v262_v32 = vpop.f32.mrb[2].mxu1 }
 0x209   :  { %v265_v33 = vpack.c.bf16 %v260_v30, %v260_v30  ;;  %v496_v34 = vpop.f32.mrb[3].mxu1 }
 0x20b   :  { %545 = vtanh.bf16 %v265_v33 }
 0x216   :  { %v546_v35 = vpop.eup %545 }
 0x217   :  { %514 = vmatmul.mubr.bf16.vlgmr.msra.gmra.mrb[4].mxu0 %v546_v35 }
 0x2ea   :  { %v365_v37 = vpop.f32.mrb[4].mxu0 }
 0x2eb   :  { %v378_v38 = vadd.f32 %v448_v36, %v365_v37  ;;  %v515_v39 = vpop.f32.mrb[5].mxu0 }
 0x2ec   :  { %v368_v40 = vpop.f32.mrb[6].mxu0 }
 0x2ed   :  { %v449_v41 = vmul.f32 -1.442695, %v378_v38  ;;  %v516_v42 = vpop.f32.mrb[7].mxu0 }
 0x2ef   :  { %547 = vpow2.f32 %v449_v41 }
 0x2f9   :  { %v548_v43 = vpop.eup %547 }
 0x2fa   :  { %v382_v44 = vadd.f32 1.0, %v548_v43 }
 0x2fc   :  { %549 = vrcp.f32 %v382_v44 }
 0x306   :  { %v550_v46 = vpop.eup %549 }
 0x307   :  { %v388_v48 = vsub.f32 %v387_v45, %v550_v46  ;;  %386 = vst.msk [vmem:[#allocation11] sm:$0xff] %vm385_vm2, %v550_v46 }
 0x309   :  { %v396_v49 = vmul.f32 %v450_v47, %v388_v48 }
 0x30b   :  { %v398_v50 = vmul.f32 %v396_v49, %v396_v49 }
 0x30d   :  { %v399_v51 = vsel %vm385_vm2, %v398_v50, 0.0 }
 0x30e   :  { %400 = vadd.xlane.f32.xlu0 %v399_v51 }
 0x30f   :  { %650 = shalt.err (!%p647_p8)
}
 0x310   :  { %s651_s8 = scalar_lea.hbm %s852_s10, 128 }
 0x311   :  { %p652_p9 = scmp.ne.s32.totalorder %s852_s10, %s651_s8  ;;  %p655_p10 = scmp.lt.u32.totalorder %s651_s8, %s852_s10 }
 0x313   :  { %p657_p11 = pnand %p655_p10, %p652_p9 }
 0x315   :  { %660 = shalt.err (!%p657_p11)
}
 0x316   :  { %416 = dma.vmem_to_hbm [thread:$0]  %s414_s0, 128, %s852_s10, [#allocation5]   ;;  %v403_v53 = vstv %s851_s9  ;;  %vm405_vm3 = vcmask 7168  }
 0x39b   :  { %v401_v52 = vpop.xlane.xlu0 %400 }
 0x39c   :  { %v402_v54 = vmul.f32 0.5, %v401_v52 }
 0x39e   :  { %v404_v55 = vsub.f32 %v403_v53, %v402_v54 }
 0x3a0   :  { %406 = vst.msk [vmem:[%s853_s11] sm:$0xff] %vm405_vm3, %v404_v55 }
 0x3a1   :  { %667 = dma.done.wait [#allocation5], 128  }
 0x3a2   :  { %668 = vsyncadd [#allocation5], 4294967168 }
 0x3a3   :  { %424 = vsyncpa [#allocation4], 1 }
 0x3a4   :  { %425 = vsyncpa [#allocation7], 1 }
 0x3a5   :  { %426 = vsyncpa [#allocation10], 1 }
 0x3a6   :  { %427 = vsyncpa [#allocation5], 1 }

</bundles_post_ra>
